<compile_context>
chip_gen: v7x
topology: tpu7x:2x2x1
jax: 0.10.0
libtpu: 0.0.40
codegen_flags: <defaults>
</compile_context>

<pallas_src>
import math

import jax
import jax.numpy as jnp
from jax.experimental import pallas as pl
from jax.experimental.pallas import tpu as pltpu


def _round_up(x, m):
    return ((x + m - 1) // m) * m


def _cdiv(a, b):
    return (a + b - 1) // b


def mlp_kernel(x_ref, w1_ref, b1_ref, w2_ref, b2_ref, w3_ref, b3_ref, o_ref):
    # x arrives straight from HBM as f32; cast to bf16 in VMEM (no wrapper cast pass).
    x = x_ref[...].astype(jnp.bfloat16)                               # (TB, D)
    # Layer 0: Linear(D, 256) + ReLU   (f32 accumulate, bias folded into accumulator)
    h1 = b1_ref[...] + jnp.dot(x, w1_ref[...], preferred_element_type=jnp.float32)
    h1 = jnp.maximum(h1, 0.0).astype(jnp.bfloat16)
    # Layer 2: Linear(256, 256) + ReLU
    h2 = b2_ref[...] + jnp.dot(h1, w2_ref[...], preferred_element_type=jnp.float32)
    h2 = jnp.maximum(h2, 0.0).astype(jnp.bfloat16)
    # Layer 4: Linear(256, num_classes_padded)  (no activation; padded cols are zero)
    out = b3_ref[...] + jnp.dot(h2, w3_ref[...], preferred_element_type=jnp.float32)
    o_ref[...] = out.astype(o_ref.dtype)      # lane-dense bf16 store (128-col padded)


def _resident_spec(shape):
    """BlockSpec for a grid-invariant (weight/bias) block: single VMEM buffer."""
    try:
        return pl.BlockSpec(shape, lambda i: (0, 0), pipeline_mode=pl.Buffered(1))
    except (AttributeError, TypeError, ValueError):
        # Older JAX without pipeline_mode / Buffered: plain resident spec.
        return pl.BlockSpec(shape, lambda i: (0, 0))


def fully_connected_forward(x_nchw, params, *, tile_b=1024):
    """x_nchw: (B, C, H, W) float32.  params: (in,out) weights + (1,out) biases."""
    B = x_nchw.shape[0]
    x = x_nchw.reshape(B, -1)                 # flatten like torch .view(B,-1); stays f32
    D = x.shape[1]

    w1 = params["w1"].astype(jnp.bfloat16)
    w2 = params["w2"].astype(jnp.bfloat16)
    w3 = params["w3"].astype(jnp.bfloat16)
    b1 = params["b1"].astype(jnp.float32)
    b2 = params["b2"].astype(jnp.float32)
    b3 = params["b3"].astype(jnp.float32)

    H1 = w1.shape[1]
    H2 = w2.shape[1]
    num_classes = w3.shape[1]

    # --- Lane-align contraction dim once (e.g. 784 -> 896 for real FashionMNIST). ---
    d_pad = _round_up(D, 128)
    if d_pad != D:
        w1 = jnp.pad(w1, ((0, d_pad - D), (0, 0)))

    # --- Lane-dense output: pad final layer to a multiple of 128 output columns. ---
    n_pad = _round_up(num_classes, 128)
    if n_pad != num_classes:
        w3 = jnp.pad(w3, ((0, 0), (0, n_pad - num_classes)))
        b3 = jnp.pad(b3, ((0, 0), (0, n_pad - num_classes)))

    # --- Batch tiling: big tiles, minimal (<= 8 + per-tile-rounding) padding,
    # and >= 2 grid steps whenever possible so v7x megacore shards the batch. ---
    b8 = _round_up(max(B, 1), 8)
    n_tiles = _cdiv(b8, tile_b)
    if b8 >= 16:
        n_tiles = max(n_tiles, 2)
    tb = _round_up(_cdiv(b8, n_tiles), 8)
    b_pad = n_tiles * tb

    if b_pad != B or d_pad != D:
        x = jnp.pad(x, ((0, b_pad - B), (0, d_pad - D)))

    grid = (n_tiles,)

    flops = 2 * b_pad * (d_pad * H1 + H1 * H2 + H2 * n_pad)
    bytes_accessed = (
        b_pad * d_pad * 4                                   # x (f32, cast in-kernel)
        + (w1.size + w2.size + w3.size) * 2                 # bf16 weights
        + (b1.size + b2.size + b3.size) * 4                 # f32 biases
        + b_pad * n_pad * 2                                 # bf16 output
    )

    out = pl.pallas_call(
        mlp_kernel,
        out_shape=jax.ShapeDtypeStruct((b_pad, n_pad), jnp.bfloat16),
        grid=grid,
        in_specs=[
            pl.BlockSpec((tb, d_pad), lambda i: (i, 0)),   # x: tiled over batch
            _resident_spec((d_pad, H1)),                   # w1: resident, single buffer
            _resident_spec((1, H1)),                       # b1
            _resident_spec((H1, H2)),                      # w2
            _resident_spec((1, H2)),                       # b2
            _resident_spec((H2, n_pad)),                   # w3 (class-padded)
            _resident_spec((1, n_pad)),                    # b3 (class-padded)
        ],
        out_specs=pl.BlockSpec((tb, n_pad), lambda i: (i, 0)),
        compiler_params=pltpu.CompilerParams(
            dimension_semantics=("parallel",),
        ),
        cost_estimate=pl.CostEstimate(
            flops=flops, transcendentals=0, bytes_accessed=bytes_accessed
        ),
    )(x, w1, b1, w2, b2, w3, b3)

    # Slice away batch/class padding; return f32 logits like the torch module.
    return out[:B, :num_classes].astype(jnp.float32)


def init_params(key, input_size, num_classes):
    """Deterministic init mirroring the PyTorch module's init()."""
    k1, k2, k3 = jax.random.split(key, 3)

    # model[0]: weight ~ N(0, 1), bias = 0
    w1 = jax.random.normal(k1, (input_size, 256), dtype=jnp.float32)
    b1 = jnp.zeros((1, 256), dtype=jnp.float32)

    # model[2], model[4]: kaiming_uniform_(a=sqrt(2)) -> U(-sqrt(2/fan_in), +sqrt(2/fan_in))
    def kaiming_uniform(k, fan_in, fan_out):
        bound = math.sqrt(2.0 / fan_in)
        return jax.random.uniform(
            k, (fan_in, fan_out), dtype=jnp.float32, minval=-bound, maxval=bound
        )

    w2 = kaiming_uniform(k2, 256, 256)
    b2 = jnp.zeros((1, 256), dtype=jnp.float32)
    w3 = kaiming_uniform(k3, 256, num_classes)
    b3 = jnp.zeros((1, num_classes), dtype=jnp.float32)

    return {"w1": w1, "b1": b1, "w2": w2, "b2": b2, "w3": w3, "b3": b3}


def reference_forward(x_nchw, params):
    """Pure-JAX reference using the same bf16-operand / f32-accumulate recipe."""
    x = x_nchw.reshape(x_nchw.shape[0], -1).astype(jnp.bfloat16)
    w1 = params["w1"].astype(jnp.bfloat16)
    w2 = params["w2"].astype(jnp.bfloat16)
    w3 = params["w3"].astype(jnp.bfloat16)
    h1 = jnp.maximum(
        jnp.dot(x, w1, preferred_element_type=jnp.float32) + params["b1"], 0.0
    ).astype(jnp.bfloat16)
    h2 = jnp.maximum(
        jnp.dot(h1, w2, preferred_element_type=jnp.float32) + params["b2"], 0.0
    ).astype(jnp.bfloat16)
    return jnp.dot(h2, w3, preferred_element_type=jnp.float32) + params["b3"]


if __name__ == "__main__":
    key = jax.random.PRNGKey(0)
    kx, kp = jax.random.split(key)

    # Small FashionMNIST-like input: B=2, C=1, H=W=16 -> input_size=256, num_classes=10
    B, C, H, W = 2, 1, 16, 16
    input_size = C * H * W
    num_classes = 10

    x = jax.random.normal(kx, (B, C, H, W), dtype=jnp.float32)
    params = init_params(kp, input_size, num_classes)

    out = fully_connected_forward(x, params)
    out = jax.block_until_ready(out)

    ref = reference_forward(x, params)
    assert out.shape == (B, num_classes)
    # Tolerance covers the final bf16 logit store (rel ~4e-3) on top of the shared
    # bf16-operand / f32-accumulate recipe.
    assert jnp.allclose(out, ref, atol=1e-1, rtol=2e-2), "mismatch vs pure-JAX reference"

    print("KERNEL_OK")
</pallas_src>

<mosaic_0001>
module attributes {stable_mosaic.version = 11 : i64} {
  func.func @mlp_kernel(%arg0: i32, %arg1: memref<8x256xf32, #tpu.memory_space<vmem>>, %arg2: memref<256x256xbf16, #tpu.memory_space<vmem>>, %arg3: memref<1x256xf32, #tpu.memory_space<vmem>>, %arg4: memref<256x256xbf16, #tpu.memory_space<vmem>>, %arg5: memref<1x256xf32, #tpu.memory_space<vmem>>, %arg6: memref<256x128xbf16, #tpu.memory_space<vmem>>, %arg7: memref<1x128xf32, #tpu.memory_space<vmem>>, %arg8: memref<8x128xbf16, #tpu.memory_space<vmem>>) attributes {dimension_semantics = [#tpu.dimension_semantics<parallel>], iteration_bounds = array<i64: 1>, scalar_prefetch = 0 : i64, scratch_operands = 0 : i64, tpu.core_type = #tpu.core_type<tc>, window_params = [{transform_indices = @transform_0, window_bounds = array<i64: 8, 256>}, {pipeline_mode = #tpu.pipeline_mode<synchronous>, transform_indices = @transform_1, window_bounds = array<i64: 256, 256>}, {pipeline_mode = #tpu.pipeline_mode<synchronous>, transform_indices = @transform_2, window_bounds = array<i64: 1, 256>}, {pipeline_mode = #tpu.pipeline_mode<synchronous>, transform_indices = @transform_3, window_bounds = array<i64: 256, 256>}, {pipeline_mode = #tpu.pipeline_mode<synchronous>, transform_indices = @transform_4, window_bounds = array<i64: 1, 256>}, {pipeline_mode = #tpu.pipeline_mode<synchronous>, transform_indices = @transform_5, window_bounds = array<i64: 256, 128>}, {pipeline_mode = #tpu.pipeline_mode<synchronous>, transform_indices = @transform_6, window_bounds = array<i64: 1, 128>}, {transform_indices = @transform_7, window_bounds = array<i64: 8, 128>}]} {
    %c0 = arith.constant 0 : index
    %c0_0 = arith.constant 0 : index
    %0 = vector.load %arg1[%c0, %c0_0] : memref<8x256xf32, #tpu.memory_space<vmem>>, vector<8x256xf32>
    %1 = arith.truncf %0 : vector<8x256xf32> to vector<8x256xbf16>
    %c0_1 = arith.constant 0 : index
    %c0_2 = arith.constant 0 : index
    %2 = vector.load %arg3[%c0_1, %c0_2] : memref<1x256xf32, #tpu.memory_space<vmem>>, vector<1x256xf32>
    %c0_3 = arith.constant 0 : index
    %c0_4 = arith.constant 0 : index
    %3 = vector.load %arg2[%c0_3, %c0_4] : memref<256x256xbf16, #tpu.memory_space<vmem>>, vector<256x256xbf16>
    %cst = arith.constant dense<0.000000e+00> : vector<8x256xf32>
    %4 = tpu.matmul %1, %3, %cst {dimension_numbers = #tpu.dot_dimension_numbers<[1], [0], [0], [1], [0, 0, 1, 1], [], []>} : vector<8x256xbf16>, vector<256x256xbf16>, vector<8x256xf32> -> vector<8x256xf32>
    %5 = vector.broadcast %2 : vector<1x256xf32> to vector<8x256xf32>
    %6 = arith.addf %5, %4 : vector<8x256xf32>
    %cst_5 = arith.constant 0.000000e+00 : f32
    %7 = vector.broadcast %cst_5 : f32 to vector<8x256xf32>
    %8 = arith.maximumf %6, %7 : vector<8x256xf32>
    %9 = arith.truncf %8 : vector<8x256xf32> to vector<8x256xbf16>
    %c0_6 = arith.constant 0 : index
    %c0_7 = arith.constant 0 : index
    %10 = vector.load %arg5[%c0_6, %c0_7] : memref<1x256xf32, #tpu.memory_space<vmem>>, vector<1x256xf32>
    %c0_8 = arith.constant 0 : index
    %c0_9 = arith.constant 0 : index
    %11 = vector.load %arg4[%c0_8, %c0_9] : memref<256x256xbf16, #tpu.memory_space<vmem>>, vector<256x256xbf16>
    %cst_10 = arith.constant dense<0.000000e+00> : vector<8x256xf32>
    %12 = tpu.matmul %9, %11, %cst_10 {dimension_numbers = #tpu.dot_dimension_numbers<[1], [0], [0], [1], [0, 0, 1, 1], [], []>} : vector<8x256xbf16>, vector<256x256xbf16>, vector<8x256xf32> -> vector<8x256xf32>
    %13 = vector.broadcast %10 : vector<1x256xf32> to vector<8x256xf32>
    %14 = arith.addf %13, %12 : vector<8x256xf32>
    %cst_11 = arith.constant 0.000000e+00 : f32
    %15 = vector.broadcast %cst_11 : f32 to vector<8x256xf32>
    %16 = arith.maximumf %14, %15 : vector<8x256xf32>
    %17 = arith.truncf %16 : vector<8x256xf32> to vector<8x256xbf16>
    %c0_12 = arith.constant 0 : index
    %c0_13 = arith.constant 0 : index
    %18 = vector.load %arg7[%c0_12, %c0_13] : memref<1x128xf32, #tpu.memory_space<vmem>>, vector<1x128xf32>
    %c0_14 = arith.constant 0 : index
    %c0_15 = arith.constant 0 : index
    %19 = vector.load %arg6[%c0_14, %c0_15] : memref<256x128xbf16, #tpu.memory_space<vmem>>, vector<256x128xbf16>
    %cst_16 = arith.constant dense<0.000000e+00> : vector<8x128xf32>
    %20 = tpu.matmul %17, %19, %cst_16 {dimension_numbers = #tpu.dot_dimension_numbers<[1], [0], [0], [1], [0, 0, 1, 1], [], []>} : vector<8x256xbf16>, vector<256x128xbf16>, vector<8x128xf32> -> vector<8x128xf32>
    %21 = vector.broadcast %18 : vector<1x128xf32> to vector<8x128xf32>
    %22 = arith.addf %21, %20 : vector<8x128xf32>
    %23 = arith.truncf %22 : vector<8x128xf32> to vector<8x128xbf16>
    %c0_17 = arith.constant 0 : index
    %c0_18 = arith.constant 0 : index
    %24 = vector.load %arg8[%c0_17, %c0_18] : memref<8x128xbf16, #tpu.memory_space<vmem>>, vector<8x128xbf16>
    tpu.vector_store %arg8[%c0_17, %c0_18], %23 {strides = array<i32>} : memref<8x128xbf16, #tpu.memory_space<vmem>>, vector<8x128xbf16>,
    return
  }
  func.func @transform_0(%arg0: i32) -> (i32, i32) {
    %c0_i32 = arith.constant 0 : i32
    %c0_i32_0 = arith.constant 0 : i32
    return %arg0, %c0_i32 : i32, i32
  }
  func.func @transform_1(%arg0: i32) -> (i32, i32) {
    %c0_i32 = arith.constant 0 : i32
    %c0_i32_0 = arith.constant 0 : i32
    %c0_i32_1 = arith.constant 0 : i32
    return %c0_i32, %c0_i32_0 : i32, i32
  }
  func.func @transform_2(%arg0: i32) -> (i32, i32) {
    %c0_i32 = arith.constant 0 : i32
    %c0_i32_0 = arith.constant 0 : i32
    %c0_i32_1 = arith.constant 0 : i32
    return %c0_i32, %c0_i32_0 : i32, i32
  }
  func.func @transform_3(%arg0: i32) -> (i32, i32) {
    %c0_i32 = arith.constant 0 : i32
    %c0_i32_0 = arith.constant 0 : i32
    %c0_i32_1 = arith.constant 0 : i32
    return %c0_i32, %c0_i32_0 : i32, i32
  }
  func.func @transform_4(%arg0: i32) -> (i32, i32) {
    %c0_i32 = arith.constant 0 : i32
    %c0_i32_0 = arith.constant 0 : i32
    %c0_i32_1 = arith.constant 0 : i32
    return %c0_i32, %c0_i32_0 : i32, i32
  }
  func.func @transform_5(%arg0: i32) -> (i32, i32) {
    %c0_i32 = arith.constant 0 : i32
    %c0_i32_0 = arith.constant 0 : i32
    %c0_i32_1 = arith.constant 0 : i32
    return %c0_i32, %c0_i32_0 : i32, i32
  }
  func.func @transform_6(%arg0: i32) -> (i32, i32) {
    %c0_i32 = arith.constant 0 : i32
    %c0_i32_0 = arith.constant 0 : i32
    %c0_i32_1 = arith.constant 0 : i32
    return %c0_i32, %c0_i32_0 : i32, i32
  }
  func.func @transform_7(%arg0: i32) -> (i32, i32) {
    %c0_i32 = arith.constant 0 : i32
    %c0_i32_0 = arith.constant 0 : i32
    return %arg0, %c0_i32 : i32, i32
  }
}

</mosaic_0001>

<bundles_post_ra>
// kernel: tpu_custom_call.1
= control target key start
LH: loop header
LB: loop body
LE: loop exit
PB: predicated region body
PF: predicated region fallthrough
CT: control target
= control target key end

     0   :  { %12 = vsyncpa [#allocation3], 0  ;;  %s1248_s0 = inlined_call_operand.hbm [shape: f32[8,256], index: 0, kind: input, shape index: {}]   ;;  %s1249_s1 = inlined_call_operand.hbm [shape: bf16[256,256], index: 1, kind: input, shape index: {}]   ;;  %s1250_s2 = inlined_call_operand.vmem [shape: f32[1,256], index: 2, kind: input, shape index: {}]   ;;  %s1251_s3 = inlined_call_operand.hbm [shape: bf16[256,256], index: 3, kind: input, shape index: {}]   ;;  %s1252_s4 = inlined_call_operand.vmem [shape: f32[1,256], index: 4, kind: input, shape index: {}]   ;;  %s1253_s5 = inlined_call_operand.hbm [shape: bf16[256,128], index: 5, kind: input, shape index: {}]   ;;  %s1254_s6 = inlined_call_operand.vmem [shape: f32[1,128], index: 6, kind: input, shape index: {}]   ;;  %s1255_s7 = inlined_call_operand.hbm [shape: bf16[8,128], index: 7, kind: output, shape index: {}]  }
   0x1   :  { %13 = vsyncpa [#allocation6], 0 }
   0x2   :  { %14 = vsyncpa [#allocation9], 0 }
   0x3   :  { %15 = vsyncpa [#allocation4], 0  ;;  %s1124_s24 = smov [#allocation5]   ;;  %s1006_s28 = scalar_lea.hbm %s1249_s1, 4096 }
   0x4   :  { %s31_s25 = sshll.u32 %s1124_s24, 4  ;;  %p1007_p0 = scmp.ne.s32.totalorder %s1249_s1, %s1006_s28  ;;  %s32_s25 = int_to_ptr.vmem [resolvable:$true] %s31_s25 }
   0x5   :  { %p1010_p1 = scmp.lt.u32.totalorder %s1006_s28, %s1249_s1 }
   0x7   :  { %p1012_p2 = pnand %p1010_p1, %p1007_p0 }
   0x9   :  { %1015 = shalt.err (!%p1012_p2)
}
   0xa   :  { %s1016_s10 = scalar_lea.vmem %s32_s25, 4096  ;;  %p1021_p4 = scmp.lt.s32.totalorder %s32_s25, %s32_s25 }
   0xb   :  { %p1017_p3 = scmp.ne.s32.totalorder %s32_s25, %s1016_s10  ;;  %p1022_p5 = scmp.lt.s32.totalorder %s1016_s10, %s1016_s10 }
   0xd   :  { %p1023_p6 = por %p1022_p5, %p1021_p4 }
   0xf   :  { %p1024_p7 = pnand %p1023_p6, %p1017_p3 }
  0x11   :  { %1027 = shalt.err (!%p1024_p7)
}
  0x12   :  { %s1125_s11 = smov 128   ;;  %s1126_s12 = smov 8  }
  0x13   :  { %37 = dma.hbm_to_vmem [thread:$0]  %s1249_s1, 4096, %s32_s25, [#allocation6], %s1125_s11, %s1125_s11, %s1126_s12  }
  0x14   :  { %s1127_s15 = smov [#allocation2]   ;;  %s1128_s17 = smov [#allocation7]  }
  0x15   :  { %s22_s16 = sshll.u32 %s1127_s15, 4  ;;  %s45_s18 = sshll.u32 %s1128_s17, 4  ;;  %s23_s16 = int_to_ptr.vmem [resolvable:$true] %s22_s16  ;;  %s46_s18 = int_to_ptr.vmem [resolvable:$true] %s45_s18 }
  0x16   :  { %s1028_s21 = scalar_lea.hbm %s1248_s0, 256 }
  0x17   :  { %p1029_p8 = scmp.ne.s32.totalorder %s1248_s0, %s1028_s21  ;;  %p1032_p9 = scmp.lt.u32.totalorder %s1028_s21, %s1248_s0 }
  0x19   :  { %p1034_p10 = pnand %p1032_p9, %p1029_p8 }
  0x1b   :  { %1037 = shalt.err (!%p1034_p10)
}
  0x1c   :  { %s1038_s1 = scalar_lea.vmem %s23_s16, 256  ;;  %p1043_p12 = scmp.lt.s32.totalorder %s23_s16, %s23_s16 }
  0x1d   :  { %p1039_p11 = scmp.ne.s32.totalorder %s23_s16, %s1038_s1  ;;  %p1044_p13 = scmp.lt.s32.totalorder %s1038_s1, %s1038_s1 }
  0x1f   :  { %p1045_p0 = por %p1044_p13, %p1043_p12 }
  0x21   :  { %p1046_p1 = pnand %p1045_p0, %p1039_p11 }
  0x23   :  { %1049 = shalt.err (!%p1046_p1)
}
  0x24   :  { %25 = dma.hbm_to_vmem [thread:$0]  %s1248_s0, 256, %s23_s16, [#allocation3]  }
  0x25   :  { %s1050_s30 = scalar_lea.hbm %s1251_s3, 4096 }
  0x26   :  { %p1051_p2 = scmp.ne.s32.totalorder %s1251_s3, %s1050_s30  ;;  %p1054_p3 = scmp.lt.u32.totalorder %s1050_s30, %s1251_s3 }
  0x28   :  { %p1056_p4 = pnand %p1054_p3, %p1051_p2 }
  0x2a   :  { %1059 = shalt.err (!%p1056_p4)
}
  0x2b   :  { %s1060_s14 = scalar_lea.vmem %s46_s18, 4096  ;;  %p1065_p6 = scmp.lt.s32.totalorder %s46_s18, %s46_s18 }
  0x2c   :  { %p1061_p5 = scmp.ne.s32.totalorder %s46_s18, %s1060_s14  ;;  %p1066_p7 = scmp.lt.s32.totalorder %s1060_s14, %s1060_s14 }
  0x2e   :  { %p1067_p8 = por %p1066_p7, %p1065_p6 }
  0x30   :  { %p1068_p9 = pnand %p1067_p8, %p1061_p5 }
  0x32   :  { %1071 = shalt.err (!%p1068_p9)
}
  0x33   :  { %51 = dma.hbm_to_vmem [thread:$0]  %s1251_s3, 4096, %s46_s18, [#allocation6], %s1125_s11, %s1125_s11, %s1126_s12  }
  0x34   :  { %s1129_s16 = smov [#allocation8]   ;;  %s1072_s21 = scalar_lea.hbm %s1253_s5, 2048 }
  0x35   :  { %s59_s17 = sshll.u32 %s1129_s16, 4  ;;  %p1073_p10 = scmp.ne.s32.totalorder %s1253_s5, %s1072_s21  ;;  %s60_s17 = int_to_ptr.vmem [resolvable:$true] %s59_s17 }
  0x36   :  { %p1076_p11 = scmp.lt.u32.totalorder %s1072_s21, %s1253_s5 }
  0x38   :  { %p1078_p12 = pnand %p1076_p11, %p1073_p10 }
  0x3a   :  { %1081 = shalt.err (!%p1078_p12)
}
  0x3b   :  { %s1082_s1 = scalar_lea.vmem %s60_s17, 2048  ;;  %p1087_p0 = scmp.lt.s32.totalorder %s60_s17, %s60_s17 }
  0x3c   :  { %p1083_p13 = scmp.ne.s32.totalorder %s60_s17, %s1082_s1  ;;  %p1088_p1 = scmp.lt.s32.totalorder %s1082_s1, %s1082_s1 }
  0x3e   :  { %p1089_p2 = por %p1088_p1, %p1087_p0 }
  0x40   :  { %p1090_p3 = pnand %p1089_p2, %p1083_p13 }
  0x42   :  { %1093 = shalt.err (!%p1090_p3)
}
  0x43   :  { %s1130_s3 = smov 64   ;;  %s1131_s11 = smov 4  }
  0x44   :  { %65 = dma.hbm_to_vmem [thread:$0]  %s1253_s5, 2048, %s60_s17, [#allocation9], %s1130_s3, %s1130_s3, %s1131_s11  }
  0x45   :  { %1116 = dma.done.wait [#allocation3], 256  }
  0x46   :  { %1117 = vsyncadd [#allocation3], 4294967040 }
  0x47   :  { %1118 = dma.done.wait [#allocation6], 8192  }
  0x48   :  { %1119 = vsyncadd [#allocation6], 4294959104 }
  0x49   :  { %1120 = dma.done.wait [#allocation9], 2048  }
  0x4a   :  { %1121 = vsyncadd [#allocation9], 4294965248  ;;  %v894_v0 = vld [vmem:[#allocation5 + $0x4] ss:$8 sps:$4 sm:$0xff]   ;;  %v896_v1 = vld [vmem:[#allocation5] ss:$8 sps:$4 sm:$0xff]  }
  0x4b   :  { %278 = vmatprep.subr.bf16.mxu0 %v894_v0  ;;  %v897_v2 = vld [vmem:[#allocation5 + $0x14] ss:$8 sps:$4 sm:$0xff]   ;;  %v899_v3 = vld [vmem:[#allocation5 + $0x10] ss:$8 sps:$4 sm:$0xff]   ;;  %v900_v4 = vld [vmem:[#allocation5 + $0x24] ss:$8 sps:$4 sm:$0xff]  }
  0x4c   :  { %279 = vmatpush1.bf16.msra.mxu0 %v896_v1  ;;  %v902_v5 = vld [vmem:[#allocation5 + $0x20] ss:$8 sps:$4 sm:$0xff]   ;;  %v903_v6 = vld [vmem:[#allocation5 + $0x34] ss:$8 sps:$4 sm:$0xff]   ;;  %v905_v7 = vld [vmem:[#allocation5 + $0x30] ss:$8 sps:$4 sm:$0xff]  }
  0x4d   :  { %280 = vmatprep.subr.bf16.mxu0 %v897_v2  ;;  %v906_v8 = vld [vmem:[#allocation5 + $0x44] ss:$8 sps:$4 sm:$0xff]   ;;  %v908_v9 = vld [vmem:[#allocation5 + $0x40] ss:$8 sps:$4 sm:$0xff]   ;;  %v909_v10 = vld [vmem:[#allocation5 + $0x54] ss:$8 sps:$4 sm:$0xff]  }
  0x4e   :  { %v911_v11 = vld [vmem:[#allocation5 + $0x50] ss:$8 sps:$4 sm:$0xff]   ;;  %v912_v12 = vld [vmem:[#allocation5 + $0x64] ss:$8 sps:$4 sm:$0xff]   ;;  %v914_v13 = vld [vmem:[#allocation5 + $0x60] ss:$8 sps:$4 sm:$0xff]  }
  0x4f   :  { %v82_v14 = vld [vmem:[#allocation2 + $0x8] sm:$0xff]  ;;  %v942_v16 = vld [vmem:[#allocation7 + $0x4] ss:$8 sps:$4 sm:$0xff]   ;;  %v944_v17 = vld [vmem:[#allocation7] ss:$8 sps:$4 sm:$0xff]  }
  0x50   :  { %281 = vmatpush1.bf16.msra.mxu0 %v899_v3  ;;  %v84_v15 = vpack.c.bf16 %v82_v14, %v82_v14  ;;  %v915_v18 = vld [vmem:[#allocation5 + $0x74] ss:$8 sps:$4 sm:$0xff]   ;;  %v917_v20 = vld [vmem:[#allocation5 + $0x70] ss:$8 sps:$4 sm:$0xff]   ;;  %529 = vmatprep.subr.bf16.mxu1 %v942_v16  ;;  %v948_v22 = vld [vmem:[#allocation7 + $0x24] ss:$8 sps:$4 sm:$0xff]   ;;  %v320_v16 = vlaneseq }
  0x51   :  { %282 = vmatprep.subr.bf16.mxu0 %v900_v4  ;;  %v945_v19 = vld [vmem:[#allocation7 + $0x14] ss:$8 sps:$4 sm:$0xff]   ;;  %530 = vmatpush1.bf16.msra.mxu1 %v944_v17  ;;  %v947_v21 = vld [vmem:[#allocation7 + $0x10] ss:$8 sps:$4 sm:$0xff]   ;;  %v918_v23 = vld [vmem:[#allocation5 + $0x84] ss:$8 sps:$4 sm:$0xff]  }
  0x52   :  { %310 = vmatprep.mubr.bf16.mxu0 %v84_v15  ;;  %531 = vmatprep.subr.bf16.mxu1 %v945_v19  ;;  %v920_v24 = vld [vmem:[#allocation5 + $0x80] ss:$8 sps:$4 sm:$0xff]   ;;  %v951_v26 = vld [vmem:[#allocation7 + $0x34] ss:$8 sps:$4 sm:$0xff]   ;;  %v923_v28 = vld [vmem:[#allocation5 + $0x90] ss:$8 sps:$4 sm:$0xff]  }
  0x53   :  { %v950_v25 = vld [vmem:[#allocation7 + $0x20] ss:$8 sps:$4 sm:$0xff]   ;;  %v921_v27 = vld [vmem:[#allocation5 + $0x94] ss:$8 sps:$4 sm:$0xff]   ;;  %v953_v29 = vld [vmem:[#allocation7 + $0x30] ss:$8 sps:$4 sm:$0xff]  }
  0x54   :  { %283 = vmatpush1.bf16.msra.mxu0 %v902_v5  ;;  %v954_v30 = vld [vmem:[#allocation7 + $0x44] ss:$8 sps:$4 sm:$0xff]   ;;  %v926_v32 = vld [vmem:[#allocation5 + $0xa0] ss:$8 sps:$4 sm:$0xff]   ;;  %v957_v34 = vld [vmem:[#allocation7 + $0x54] ss:$8 sps:$4 sm:$0xff]  }
  0x55   :  { %284 = vmatprep.subr.bf16.mxu0 %v903_v6  ;;  %532 = vmatpush1.bf16.msra.mxu1 %v947_v21  ;;  %v924_v31 = vld [vmem:[#allocation5 + $0xa4] ss:$8 sps:$4 sm:$0xff]   ;;  %v956_v33 = vld [vmem:[#allocation7 + $0x40] ss:$8 sps:$4 sm:$0xff]   ;;  %v927_v35 = vld [vmem:[#allocation5 + $0xb4] ss:$8 sps:$4 sm:$0xff]  }
  0x56   :  { %533 = vmatprep.subr.bf16.mxu1 %v948_v22  ;;  %v959_v36 = vld [vmem:[#allocation7 + $0x50] ss:$8 sps:$4 sm:$0xff]   ;;  %v960_v38 = vld [vmem:[#allocation7 + $0x64] ss:$8 sps:$4 sm:$0xff]   ;;  %v962_v40 = vld [vmem:[#allocation7 + $0x60] ss:$8 sps:$4 sm:$0xff]  }
  0x57   :  { %v929_v37 = vld [vmem:[#allocation5 + $0xb0] ss:$8 sps:$4 sm:$0xff]   ;;  %v930_v39 = vld [vmem:[#allocation5 + $0xc4] ss:$8 sps:$4 sm:$0xff]   ;;  %v932_v41 = vld [vmem:[#allocation5 + $0xc0] ss:$8 sps:$4 sm:$0xff]  }
  0x58   :  { %285 = vmatpush1.bf16.msra.mxu0 %v905_v7  ;;  %v963_v42 = vld [vmem:[#allocation7 + $0x74] ss:$8 sps:$4 sm:$0xff]   ;;  %v965_v44 = vld [vmem:[#allocation7 + $0x70] ss:$8 sps:$4 sm:$0xff]   ;;  %v966_v46 = vld [vmem:[#allocation7 + $0x84] ss:$8 sps:$4 sm:$0xff]  }
  0x59   :  { %286 = vmatprep.subr.bf16.mxu0 %v906_v8  ;;  %534 = vmatpush1.bf16.msra.mxu1 %v950_v25  ;;  %v933_v43 = vld [vmem:[#allocation5 + $0xd4] ss:$8 sps:$4 sm:$0xff]   ;;  %v935_v45 = vld [vmem:[#allocation5 + $0xd0] ss:$8 sps:$4 sm:$0xff]   ;;  %v936_v47 = vld [vmem:[#allocation5 + $0xe4] ss:$8 sps:$4 sm:$0xff]  }
  0x5a   :  { %535 = vmatprep.subr.bf16.mxu1 %v951_v26  ;;  %v968_v48 = vld [vmem:[#allocation7 + $0x80] ss:$8 sps:$4 sm:$0xff]   ;;  %v969_v50 = vld [vmem:[#allocation7 + $0x94] ss:$8 sps:$4 sm:$0xff]   ;;  %v971_v52 = vld [vmem:[#allocation7 + $0x90] ss:$8 sps:$4 sm:$0xff]  }
  0x5b   :  { %v938_v49 = vld [vmem:[#allocation5 + $0xe0] ss:$8 sps:$4 sm:$0xff]   ;;  %v939_v51 = vld [vmem:[#allocation5 + $0xf4] ss:$8 sps:$4 sm:$0xff]   ;;  %v941_v53 = vld [vmem:[#allocation5 + $0xf0] ss:$8 sps:$4 sm:$0xff]  }
  0x5c   :  { %287 = vmatpush1.bf16.msra.mxu0 %v908_v9  ;;  %v81_v54 = vld [vmem:[#allocation2] sm:$0xff]  ;;  %v972_v55 = vld [vmem:[#allocation7 + $0xa4] ss:$8 sps:$4 sm:$0xff]   ;;  %v974_v57 = vld [vmem:[#allocation7 + $0xa0] ss:$8 sps:$4 sm:$0xff]   ;;  %v321_v17 = vshrl.u32 %v320_v16, 7 }
  0x5d   :  { %288 = vmatprep.subr.bf16.mxu0 %v909_v10  ;;  %536 = vmatpush1.bf16.msra.mxu1 %v953_v29  ;;  %v83_v56 = vpack.c.bf16 %v81_v54, %v81_v54  ;;  %v975_v58 = vld [vmem:[#allocation7 + $0xb4] ss:$8 sps:$4 sm:$0xff]   ;;  %v977_v59 = vld [vmem:[#allocation7 + $0xb0] ss:$8 sps:$4 sm:$0xff]   ;;  %v978_v60 = vld [vmem:[#allocation7 + $0xc4] ss:$8 sps:$4 sm:$0xff]  }
  0x5e   :  { %537 = vmatprep.subr.bf16.mxu1 %v954_v30  ;;  %v980_v61 = vld [vmem:[#allocation7 + $0xc0] ss:$8 sps:$4 sm:$0xff]   ;;  %v981_v62 = vld [vmem:[#allocation7 + $0xd4] ss:$8 sps:$4 sm:$0xff]   ;;  %v983_v63 = vld [vmem:[#allocation7 + $0xd0] ss:$8 sps:$4 sm:$0xff]  }
  0x5f   :  { %v984_v0 = vld [vmem:[#allocation7 + $0xe4] ss:$8 sps:$4 sm:$0xff]   ;;  %v986_v1 = vld [vmem:[#allocation7 + $0xe0] ss:$8 sps:$4 sm:$0xff]   ;;  %v987_v2 = vld [vmem:[#allocation7 + $0xf4] ss:$8 sps:$4 sm:$0xff]  }
  0x60   :  { %289 = vmatpush1.bf16.msra.mxu0 %v911_v11  ;;  %v989_v3 = vld [vmem:[#allocation7 + $0xf0] ss:$8 sps:$4 sm:$0xff]   ;;  %v990_v4 = vld [vmem:[#allocation8 + $0x40] sm:$0xff]   ;;  %v992_v6 = vld [vmem:[#allocation8 + $0x48] sm:$0xff]  }
  0x61   :  { %290 = vmatprep.subr.bf16.mxu0 %v912_v12  ;;  %538 = vmatpush1.bf16.msra.mxu1 %v956_v33  ;;  %v991_v5 = vld [vmem:[#allocation8] sm:$0xff]   ;;  %v993_v7 = vld [vmem:[#allocation8 + $0x8] sm:$0xff]   ;;  %v994_v8 = vld [vmem:[#allocation8 + $0x50] sm:$0xff]  }
  0x62   :  { %539 = vmatprep.subr.bf16.mxu1 %v957_v34  ;;  %v995_v9 = vld [vmem:[#allocation8 + $0x10] sm:$0xff]   ;;  %v996_v10 = vld [vmem:[#allocation8 + $0x58] sm:$0xff]   ;;  %v998_v12 = vld [vmem:[#allocation8 + $0x60] sm:$0xff]  }
  0x63   :  { %v997_v11 = vld [vmem:[#allocation8 + $0x18] sm:$0xff]   ;;  %v1000_v14 = vld [vmem:[#allocation8 + $0x68] sm:$0xff]   ;;  %v85_v19 = vld [vmem:[%s1250_s2] sm:$0x3] }
  0x64   :  { %291 = vmatpush1.bf16.msra.mxu0 %v914_v13  ;;  %v999_v13 = vld [vmem:[#allocation8 + $0x20] sm:$0xff]   ;;  %v1001_v15 = vld [vmem:[#allocation8 + $0x28] sm:$0xff]   ;;  %v1002_v33 = vld [vmem:[#allocation8 + $0x70] sm:$0xff]  }
  0x65   :  { %292 = vmatprep.subr.bf16.mxu0 %v915_v18  ;;  %540 = vmatpush1.bf16.msra.mxu1 %v959_v36  ;;  %v322_v18 = vsub.s32 0, %v321_v17  ;;  %v1003_v34 = vld [vmem:[#allocation8 + $0x30] sm:$0xff]   ;;  %v1005_v36 = vld [vmem:[#allocation8 + $0x38] sm:$0xff]  }
  0x66   :  { %541 = vmatprep.subr.bf16.mxu1 %v960_v38 }
  0x67   :  { %v323_v21 = vrot.slane %v85_v19, %v322_v18 }
  0x68   :  { %293 = vmatpush1.bf16.msra.mxu0 %v917_v20  ;;  %v326_v20 = vsub.s32 1, %v321_v17 }
  0x69   :  { %294 = vmatprep.subr.bf16.mxu0 %v918_v23  ;;  %542 = vmatpush1.bf16.msra.mxu1 %v962_v40 }
  0x6a   :  { %543 = vmatprep.subr.bf16.mxu1 %v963_v42  ;;  %v327_v22 = vrot.slane %v85_v19, %v326_v20 }
  0x6c   :  { %295 = vmatpush1.bf16.msra.mxu0 %v920_v24 }
  0x6d   :  { %296 = vmatprep.subr.bf16.mxu0 %v921_v27  ;;  %544 = vmatpush1.bf16.msra.mxu1 %v965_v44 }
  0x6e   :  { %545 = vmatprep.subr.bf16.mxu1 %v966_v46 }
  0x70   :  { %297 = vmatpush1.bf16.msra.mxu0 %v923_v28 }
  0x71   :  { %298 = vmatprep.subr.bf16.mxu0 %v924_v31  ;;  %546 = vmatpush1.bf16.msra.mxu1 %v968_v48 }
  0x72   :  { %547 = vmatprep.subr.bf16.mxu1 %v969_v50 }
  0x74   :  { %299 = vmatpush1.bf16.msra.mxu0 %v926_v32 }
  0x75   :  { %300 = vmatprep.subr.bf16.mxu0 %v927_v35  ;;  %548 = vmatpush1.bf16.msra.mxu1 %v971_v52  ;;  %v1004_v35 = vld [vmem:[#allocation8 + $0x78] sm:$0xff]  }
  0x76   :  { %549 = vmatprep.subr.bf16.mxu1 %v972_v55 }
  0x78   :  { %301 = vmatpush1.bf16.msra.mxu0 %v929_v37  ;;  %v336_v37 = vld [vmem:[%s1252_s4] sm:$0x3]  ;;  %s1132_s4 = smov [#allocation10]  }
  0x79   :  { %302 = vmatprep.subr.bf16.mxu0 %v930_v39  ;;  %550 = vmatpush1.bf16.msra.mxu1 %v974_v57  ;;  %v574_v38 = vrot.slane %v336_v37, %v322_v18  ;;  %v578_v39 = vrot.slane %v336_v37, %v326_v20  ;;  %s771_s30 = sshll.u32 %s1132_s4, 4  ;;  %s772_s30 = int_to_ptr.vmem [resolvable:$true] %s771_s30 }
  0x7a   :  { %551 = vmatprep.subr.bf16.mxu1 %v975_v58  ;;  %s1094_s8 = scalar_lea.vmem %s772_s30, 64  ;;  %p1099_p5 = scmp.lt.s32.totalorder %s772_s30, %s772_s30 }
  0x7b   :  { %p1095_p4 = scmp.ne.s32.totalorder %s772_s30, %s1094_s8  ;;  %p1100_p6 = scmp.lt.s32.totalorder %s1094_s8, %s1094_s8 }
  0x7c   :  { %303 = vmatpush1.bf16.msra.mxu0 %v932_v41 }
  0x7d   :  { %304 = vmatprep.subr.bf16.mxu0 %v933_v43  ;;  %552 = vmatpush1.bf16.msra.mxu1 %v977_v59  ;;  %p1101_p7 = por %p1100_p6, %p1099_p5 }
  0x7e   :  { %553 = vmatprep.subr.bf16.mxu1 %v978_v60 }
  0x7f   :  { %p1102_p8 = pnand %p1101_p7, %p1095_p4 }
  0x80   :  { %305 = vmatpush1.bf16.msra.mxu0 %v935_v45 }
  0x81   :  { %306 = vmatprep.subr.bf16.mxu0 %v936_v47  ;;  %554 = vmatpush1.bf16.msra.mxu1 %v980_v61 }
  0x82   :  { %555 = vmatprep.subr.bf16.mxu1 %v981_v62 }
  0x84   :  { %307 = vmatpush1.bf16.msra.mxu0 %v938_v49 }
  0x85   :  { %308 = vmatprep.subr.bf16.mxu0 %v939_v51  ;;  %556 = vmatpush1.bf16.msra.mxu1 %v983_v63  ;;  %v862_v51 = vld [vmem:[%s1254_s6] ss:$0 sm:$0xff] }
  0x86   :  { %557 = vmatprep.subr.bf16.mxu1 %v984_v0 }
  0x88   :  { %309 = vmatpush1.bf16.msra.mxu0 %v941_v53 }
  0x89   :  { %558 = vmatpush1.bf16.msra.mxu1 %v986_v1  ;;  %863 = vmatprep.subr.bf16.mxu0 %v990_v4 }
  0x8a   :  { %559 = vmatprep.subr.bf16.mxu1 %v987_v2 }
  0x8b   :  { %311 = vmatmul.mubr.bf16.vlgmr.msra.gmra.mrb[0].mxu0 %v83_v56 }
  0x8c   :  { %864 = vmatpush3.bf16.msra.mxu0 %v991_v5 }
  0x8d   :  { %560 = vmatpush1.bf16.msra.mxu1 %v989_v3  ;;  %865 = vmatprep.subr.bf16.mxu0 %v992_v6 }
  0x90   :  { %866 = vmatpush3.bf16.msra.mxu0 %v993_v7 }
  0x91   :  { %867 = vmatprep.subr.bf16.mxu0 %v994_v8 }
  0x94   :  { %868 = vmatpush3.bf16.msra.mxu0 %v995_v9 }
  0x95   :  { %869 = vmatprep.subr.bf16.mxu0 %v996_v10 }
  0x98   :  { %870 = vmatpush3.bf16.msra.mxu0 %v997_v11 }
  0x99   :  { %871 = vmatprep.subr.bf16.mxu0 %v998_v12 }
  0x9c   :  { %872 = vmatpush3.bf16.msra.mxu0 %v999_v13 }
  0x9d   :  { %873 = vmatprep.subr.bf16.mxu0 %v1000_v14 }
  0xa0   :  { %874 = vmatpush3.bf16.msra.mxu0 %v1001_v15 }
  0xa1   :  { %875 = vmatprep.subr.bf16.mxu0 %v1002_v33 }
  0xa4   :  { %876 = vmatpush3.bf16.msra.mxu0 %v1003_v34 }
  0xa5   :  { %877 = vmatprep.subr.bf16.mxu0 %v1004_v35 }
  0xa8   :  { %878 = vmatpush3.bf16.msra.mxu0 %v1005_v36 }
 0x15e   :  { %v312_v23 = vpop.f32.mrb[0].mxu0 }
 0x15f   :  { %v330_v24 = vadd.f32 %v323_v21, %v312_v23  ;;  %v314_v25 = vpop.f32.mrb[1].mxu0 }
 0x160   :  { %v331_v26 = vadd.f32 %v327_v22, %v314_v25  ;;  %v316_v27 = vpop.f32.mrb[2].mxu0 }
 0x161   :  { %v332_v28 = vmax.f32 %v330_v24, 0.0  ;;  %v317_v29 = vpop.f32.mrb[3].mxu0 }
 0x162   :  { %v333_v30 = vmax.f32 %v331_v26, 0.0 }
 0x163   :  { %v334_v32 = vpack.c.bf16 %v332_v28, %v332_v28 }
 0x164   :  { %v335_v31 = vpack.c.bf16 %v333_v30, %v333_v30 }
 0x166   :  { %561 = vmatprep.mubr.bf16.mxu1 %v335_v31 }
 0x167   :  { %562 = vmatmul.mubr.bf16.vlgmr.msra.gmra.mrb[0].mxu1 %v334_v32 }
 0x23a   :  { %v563_v40 = vpop.f32.mrb[0].mxu1 }
 0x23b   :  { %v581_v41 = vadd.f32 %v574_v38, %v563_v40  ;;  %v565_v42 = vpop.f32.mrb[1].mxu1 }
 0x23c   :  { %v582_v43 = vadd.f32 %v578_v39, %v565_v42  ;;  %v567_v44 = vpop.f32.mrb[2].mxu1 }
 0x23d   :  { %v583_v45 = vmax.f32 %v581_v41, 0.0  ;;  %v568_v46 = vpop.f32.mrb[3].mxu1 }
 0x23e   :  { %v584_v47 = vmax.f32 %v582_v43, 0.0 }
 0x23f   :  { %v585_v49 = vpack.c.bf16 %v583_v45, %v583_v45 }
 0x240   :  { %v586_v48 = vpack.c.bf16 %v584_v47, %v584_v47 }
 0x242   :  { %748 = vmatprep.mubr.bf16.mxu0 %v586_v48 }
 0x243   :  { %749 = vmatmul.mubr.bf16.vlgmr.msra.gmra.mrb[4].mxu0 %v585_v49 }
 0x316   :  { %v879_v50 = vpop.f32.mrb[4].mxu0 }
 0x317   :  { %v880_v52 = vpop.f32.mrb[5].mxu0 }
 0x318   :  { %v881_v53 = vadd.f32 %v880_v52, %v879_v50  ;;  %v882_v54 = vpop.f32.mrb[6].mxu0 }
 0x319   :  { %v883_v55 = vpop.f32.mrb[7].mxu0 }
 0x31a   :  { %v762_v56 = vadd.f32 %v881_v53, %v862_v51 }
 0x31c   :  { %v763_v57 = vpack.c.bf16 %v762_v56, %v762_v56 }
 0x31e   :  { %764 = vst [vmem:[#allocation10] sm:$0xf] %v763_v57 }
 0x31f   :  { %1105 = shalt.err (!%p1102_p8)
}
 0x320   :  { %s1106_s6 = scalar_lea.hbm %s1255_s7, 64 }
 0x321   :  { %p1107_p9 = scmp.ne.s32.totalorder %s1255_s7, %s1106_s6  ;;  %p1110_p10 = scmp.lt.u32.totalorder %s1106_s6, %s1255_s7 }
 0x323   :  { %p1112_p11 = pnand %p1110_p10, %p1107_p9 }
 0x325   :  { %1115 = shalt.err (!%p1112_p11)
}
 0x326   :  { %774 = dma.vmem_to_hbm [thread:$0]  %s772_s30, 64, %s1255_s7, [#allocation4]  }
 0x327   :  { %1122 = dma.done.wait [#allocation4], 64  }
 0x328   :  { %1123 = vsyncadd [#allocation4], 4294967232 }
 0x329   :  { %778 = vsyncpa [#allocation3], 1 }
 0x32a   :  { %779 = vsyncpa [#allocation6], 1 }
 0x32b   :  { %780 = vsyncpa [#allocation9], 1 }
 0x32c   :  { %781 = vsyncpa [#allocation4], 1 }

</bundles_post_ra>
